<compile_context>
chip_gen: v5e
topology: v5e:2x2
jax: 0.10.0
libtpu: 0.0.40
codegen_flags: <defaults>
</compile_context>

<pallas_src>
import functools
import math

import jax
import jax.numpy as jnp
from jax import lax
from jax.experimental import pallas as pl
from jax.experimental.pallas import tpu as pltpu

_LANES = 128
_SUBLANES = 8
_MAX_TILE_ROWS = 1024      # (1024,128) f32 tile = 512 KiB; x2 inputs x2 buffers = 2 MiB VMEM
_NUM_CORE_SPLITS = 2       # leading "parallel" axis -> megacore split on v7x, serial elsewhere
_PALLAS_MIN_N = 4096       # below this, the XLA-fused jnp path beats kernel launch overhead


def _cdiv(a, b):
    return (a + b - 1) // b


def _round_up(a, b):
    return _cdiv(a, b) * b


def _hkr_reference(inp, target, alpha, min_margin=1.0, true_values=(-1, 1)):
    """Pure-jnp reference (also the small-batch fallback path)."""
    x = jnp.asarray(inp, jnp.float32).reshape(-1)
    t = jnp.asarray(target, jnp.float32).reshape(-1)
    sign = jnp.where(t > 0.0, 1.0, -1.0)
    hinge = jnp.mean(jnp.maximum(min_margin - sign * x, 0.0))
    if math.isinf(float(alpha)):
        return hinge
    v_neg, v_pos = float(true_values[0]), float(true_values[1])
    pos = (t == v_pos).astype(jnp.float32)
    neg = (t == v_neg).astype(jnp.float32)
    kr = jnp.sum(x * pos) / jnp.sum(pos) - jnp.sum(x * neg) / jnp.sum(neg)
    return float(alpha) * hinge - kr


def _hkr_partial_kernel(x_ref, t_ref, out_ref,
                        hinge_acc, psum_acc, pcnt_acc, nsum_acc, ncnt_acc, *,
                        n_valid, tile_rows, n_inner, min_margin, v_neg, v_pos,
                        hinge_only, assume_binary):
    """Streaming partial-sum kernel.

    Grid = (core_split, inner_tile).  Per core-split it emits one (8, 128)
    lane-dense block of per-lane partial sums:
      row 0: hinge partial sums
      row 1: sum(x * pos_mask)         row 2: count(pos_mask)
      row 3: sum(x * neg_mask)  [or sum(x) when assume_binary]
      row 4: count(neg_mask)    [unused when assume_binary]
    Final divides / combine happen in the JAX wrapper.
    """
    c = pl.program_id(0)   # core-split index ("parallel"; megacore on v7x)
    i = pl.program_id(1)   # streaming tile index ("arbitrary"; reduction axis)

    @pl.when(i == 0)
    def _init():
        hinge_acc[...] = jnp.zeros_like(hinge_acc)
        psum_acc[...] = jnp.zeros_like(psum_acc)
        pcnt_acc[...] = jnp.zeros_like(pcnt_acc)
        nsum_acc[...] = jnp.zeros_like(nsum_acc)
        ncnt_acc[...] = jnp.zeros_like(ncnt_acc)

    x = x_ref[...]                     # (tile_rows, 128) float32
    t = t_ref[...]

    # Validity mask for the padded tail, derived in-kernel from the global flat
    # index (no extra mask array streamed from HBM).
    row_ids = lax.broadcasted_iota(jnp.int32, (tile_rows, _LANES), 0)
    lane_ids = lax.broadcasted_iota(jnp.int32, (tile_rows, _LANES), 1)
    block = c * n_inner + i
    flat_idx = (block * tile_rows + row_ids) * _LANES + lane_ids
    valid = (flat_idx < n_valid).astype(jnp.float32)

    # hinge_margin_loss: relu(min_margin - sign(target) * input)
    sign = jnp.where(t > 0.0, 1.0, -1.0)
    hinge = jnp.maximum(min_margin - sign * x, 0.0) * valid
    hinge_acc[...] += jnp.sum(hinge, axis=0, keepdims=True)

    if not hinge_only:
        pos = jnp.where(t == v_pos, valid, 0.0)
        psum_acc[...] += jnp.sum(x * pos, axis=0, keepdims=True)
        pcnt_acc[...] += jnp.sum(pos, axis=0, keepdims=True)
        if assume_binary:
            # neg stats derived in the wrapper: neg_sum = sum(x) - pos_sum,
            # neg_cnt = N - pos_cnt (valid only if targets are in {v_neg, v_pos}).
            nsum_acc[...] += jnp.sum(x * valid, axis=0, keepdims=True)
        else:
            neg = jnp.where(t == v_neg, valid, 0.0)
            nsum_acc[...] += jnp.sum(x * neg, axis=0, keepdims=True)
            ncnt_acc[...] += jnp.sum(neg, axis=0, keepdims=True)

    @pl.when(i == n_inner - 1)
    def _finalize():
        out_ref[...] = jnp.zeros_like(out_ref)
        out_ref[0:1, :] = hinge_acc[...]
        out_ref[1:2, :] = psum_acc[...]
        out_ref[2:3, :] = pcnt_acc[...]
        out_ref[3:4, :] = nsum_acc[...]
        out_ref[4:5, :] = ncnt_acc[...]


def hkr_loss(inp, target, alpha, min_margin=1.0, true_values=(-1, 1), *,
             assume_binary_labels=True, force_pallas=False):
    """Pallas implementation of torchlip F.hkr_loss. Returns a scalar float32.

    assume_binary_labels: when True (default), targets are assumed to only take
      the two values in `true_values`, enabling the fused-reduction path.  Set
      False to get the exact explicit-mask semantics for arbitrary targets.
    """
    x = jnp.asarray(inp, dtype=jnp.float32).reshape(-1)
    # target.view(input.shape) in the torch code; flattening both is equivalent.
    t = jnp.asarray(target, dtype=jnp.float32).reshape(-1)
    n = int(x.shape[0])
    hinge_only = math.isinf(float(alpha))

    # Tiny batches: launch overhead dominates; let XLA fuse the plain jnp path.
    if n < _PALLAS_MIN_N and not force_pallas:
        return _hkr_reference(x, t, alpha, min_margin, true_values)

    # Lane-dense padded layout: (padded_rows, 128), tiled along the row axis.
    rows = max(1, _cdiv(n, _LANES))
    rows_per_split = _cdiv(rows, _NUM_CORE_SPLITS)
    tile_rows = min(_MAX_TILE_ROWS, _round_up(rows_per_split, _SUBLANES))
    n_inner = _cdiv(rows_per_split, tile_rows)
    padded_rows = _NUM_CORE_SPLITS * n_inner * tile_rows

    pad = padded_rows * _LANES - n
    x_p = jnp.pad(x, (0, pad)).reshape(padded_rows, _LANES)
    t_p = jnp.pad(t, (0, pad)).reshape(padded_rows, _LANES)

    kernel = functools.partial(
        _hkr_partial_kernel,
        n_valid=n,
        tile_rows=tile_rows,
        n_inner=n_inner,
        min_margin=float(min_margin),
        v_neg=float(true_values[0]),
        v_pos=float(true_values[1]),
        hinge_only=hinge_only,
        assume_binary=bool(assume_binary_labels),
    )

    def data_index_map(c, i):
        return (c * n_inner + i, 0)

    cost = pl.CostEstimate(
        flops=20 * padded_rows * _LANES,
        transcendentals=0,
        bytes_accessed=2 * 4 * padded_rows * _LANES
        + 4 * _NUM_CORE_SPLITS * _SUBLANES * _LANES,
    )

    parts = pl.pallas_call(
        kernel,
        out_shape=jax.ShapeDtypeStruct(
            (_NUM_CORE_SPLITS * _SUBLANES, _LANES), jnp.float32),
        grid=(_NUM_CORE_SPLITS, n_inner),
        in_specs=[
            pl.BlockSpec((tile_rows, _LANES), data_index_map),
            pl.BlockSpec((tile_rows, _LANES), data_index_map),
        ],
        out_specs=pl.BlockSpec((_SUBLANES, _LANES), lambda c, i: (c, 0)),
        scratch_shapes=[pltpu.VMEM((1, _LANES), jnp.float32) for _ in range(5)],
        compiler_params=pltpu.CompilerParams(
            dimension_semantics=("parallel", "arbitrary")),
        cost_estimate=cost,
    )(x_p, t_p)

    # Tiny final combine / divides in plain JAX (fused by XLA).
    parts = parts.reshape(_NUM_CORE_SPLITS, _SUBLANES, _LANES)
    hinge_mean = jnp.sum(parts[:, 0, :]) / n
    if hinge_only:
        return hinge_mean
    pos_sum = jnp.sum(parts[:, 1, :])
    pos_cnt = jnp.sum(parts[:, 2, :])
    if assume_binary_labels:
        neg_sum = jnp.sum(parts[:, 3, :]) - pos_sum   # sum(x) - pos_sum
        neg_cnt = n - pos_cnt
    else:
        neg_sum = jnp.sum(parts[:, 3, :])
        neg_cnt = jnp.sum(parts[:, 4, :])
    # Note: matches PyTorch NaN behavior if a class is absent from the batch.
    kr = pos_sum / pos_cnt - neg_sum / neg_cnt
    return float(alpha) * hinge_mean - kr


class HKRLoss:
    """Thin wrapper mirroring the PyTorch module interface."""

    def __init__(self, alpha, min_margin=1.0, true_values=(-1, 1), *,
                 assume_binary_labels=True, force_pallas=False):
        self.alpha = alpha
        self.min_margin = min_margin
        self.true_values = true_values
        self.assume_binary_labels = assume_binary_labels
        self.force_pallas = force_pallas

    def __call__(self, inp, target):
        return hkr_loss(inp, target, self.alpha, self.min_margin,
                        self.true_values,
                        assume_binary_labels=self.assume_binary_labels,
                        force_pallas=self.force_pallas)


if __name__ == "__main__":
    key = jax.random.PRNGKey(0)

    # Predictions from a 1-Lipschitz net: shape (N, 1); labels in {-1, +1}.
    batch = 64
    preds = jax.random.normal(key, (batch, 1), dtype=jnp.float32)
    labels = jnp.where(jnp.arange(batch) % 2 == 0, 1.0, -1.0).reshape(batch, 1)

    loss_mod = HKRLoss(alpha=10.0, min_margin=1.0, true_values=(-1, 1),
                       force_pallas=True)   # force the Pallas path for the demo
    out = jax.block_until_ready(loss_mod(preds, labels))
    ref = _hkr_reference(preds, labels, 10.0, 1.0, (-1, 1))
    assert jnp.allclose(out, ref, rtol=1e-5, atol=1e-5), (out, ref)

    # Ragged batch (not a multiple of 128): exercises the in-kernel padding mask
    # and the exact (non-fused) class-mask path.
    batch2 = 300
    preds2 = jax.random.normal(jax.random.fold_in(key, 1), (batch2, 1),
                               dtype=jnp.float32)
    labels2 = jnp.where(jnp.arange(batch2) % 3 == 0, 1.0, -1.0).reshape(batch2, 1)
    out2 = jax.block_until_ready(
        hkr_loss(preds2, labels2, 5.0, 0.5, (-1, 1),
                 assume_binary_labels=False, force_pallas=True))
    ref2 = _hkr_reference(preds2, labels2, 5.0, 0.5, (-1, 1))
    assert jnp.allclose(out2, ref2, rtol=1e-5, atol=1e-5), (out2, ref2)

    # alpha == inf -> hinge-only branch.
    out_inf = jax.block_until_ready(
        HKRLoss(alpha=float("inf"), force_pallas=True)(preds, labels))
    ref_inf = _hkr_reference(preds, labels, float("inf"), 1.0, (-1, 1))
    assert jnp.allclose(out_inf, ref_inf, rtol=1e-5, atol=1e-5), (out_inf, ref_inf)

    print("KERNEL_OK")
</pallas_src>

<mosaic_0001>
module attributes {stable_mosaic.version = 11 : i64} {
  func.func @_hkr_partial_kernel(%arg0: i32, %arg1: i32, %arg2: memref<8x128xf32, #tpu.memory_space<vmem>>, %arg3: memref<8x128xf32, #tpu.memory_space<vmem>>, %arg4: memref<8x128xf32, #tpu.memory_space<vmem>>, %arg5: memref<1x128xf32, #tpu.memory_space<vmem>>, %arg6: memref<1x128xf32, #tpu.memory_space<vmem>>, %arg7: memref<1x128xf32, #tpu.memory_space<vmem>>, %arg8: memref<1x128xf32, #tpu.memory_space<vmem>>, %arg9: memref<1x128xf32, #tpu.memory_space<vmem>>) attributes {dimension_semantics = [#tpu.dimension_semantics<parallel>, #tpu.dimension_semantics<arbitrary>], iteration_bounds = array<i64: 2, 1>, scalar_prefetch = 0 : i64, scratch_operands = 5 : i64, tpu.core_type = #tpu.core_type<tc>, window_params = [{transform_indices = @transform_0, window_bounds = array<i64: 8, 128>}, {transform_indices = @transform_1, window_bounds = array<i64: 8, 128>}, {transform_indices = @transform_2, window_bounds = array<i64: 8, 128>}]} {
    %c0_i32 = arith.constant 0 : i32
    %0 = arith.cmpi eq, %arg1, %c0_i32 : i32
    %1 = arith.extui %0 : i1 to i32
    %c0_i32_0 = arith.constant 0 : i32
    %2 = arith.cmpi ne, %1, %c0_i32_0 : i32
    scf.if %2 {
      %cst_32 = arith.constant 0.000000e+00 : f32
      %59 = vector.broadcast %cst_32 : f32 to vector<1x128xf32>
      %c0_33 = arith.constant 0 : index
      %c0_34 = arith.constant 0 : index
      %60 = vector.load %arg5[%c0_33, %c0_34] : memref<1x128xf32, #tpu.memory_space<vmem>>, vector<1x128xf32>
      tpu.vector_store %arg5[%c0_33, %c0_34], %59 {strides = array<i32>} : memref<1x128xf32, #tpu.memory_space<vmem>>, vector<1x128xf32>,
      %cst_35 = arith.constant 0.000000e+00 : f32
      %61 = vector.broadcast %cst_35 : f32 to vector<1x128xf32>
      %c0_36 = arith.constant 0 : index
      %c0_37 = arith.constant 0 : index
      %62 = vector.load %arg6[%c0_36, %c0_37] : memref<1x128xf32, #tpu.memory_space<vmem>>, vector<1x128xf32>
      tpu.vector_store %arg6[%c0_36, %c0_37], %61 {strides = array<i32>} : memref<1x128xf32, #tpu.memory_space<vmem>>, vector<1x128xf32>,
      %cst_38 = arith.constant 0.000000e+00 : f32
      %63 = vector.broadcast %cst_38 : f32 to vector<1x128xf32>
      %c0_39 = arith.constant 0 : index
      %c0_40 = arith.constant 0 : index
      %64 = vector.load %arg7[%c0_39, %c0_40] : memref<1x128xf32, #tpu.memory_space<vmem>>, vector<1x128xf32>
      tpu.vector_store %arg7[%c0_39, %c0_40], %63 {strides = array<i32>} : memref<1x128xf32, #tpu.memory_space<vmem>>, vector<1x128xf32>,
      %cst_41 = arith.constant 0.000000e+00 : f32
      %65 = vector.broadcast %cst_41 : f32 to vector<1x128xf32>
      %c0_42 = arith.constant 0 : index
      %c0_43 = arith.constant 0 : index
      %66 = vector.load %arg8[%c0_42, %c0_43] : memref<1x128xf32, #tpu.memory_space<vmem>>, vector<1x128xf32>
      tpu.vector_store %arg8[%c0_42, %c0_43], %65 {strides = array<i32>} : memref<1x128xf32, #tpu.memory_space<vmem>>, vector<1x128xf32>,
      %cst_44 = arith.constant 0.000000e+00 : f32
      %67 = vector.broadcast %cst_44 : f32 to vector<1x128xf32>
      %c0_45 = arith.constant 0 : index
      %c0_46 = arith.constant 0 : index
      %68 = vector.load %arg9[%c0_45, %c0_46] : memref<1x128xf32, #tpu.memory_space<vmem>>, vector<1x128xf32>
      tpu.vector_store %arg9[%c0_45, %c0_46], %67 {strides = array<i32>} : memref<1x128xf32, #tpu.memory_space<vmem>>, vector<1x128xf32>,
    } else {
    }
    %c0 = arith.constant 0 : index
    %c0_1 = arith.constant 0 : index
    %3 = vector.load %arg2[%c0, %c0_1] : memref<8x128xf32, #tpu.memory_space<vmem>>, vector<8x128xf32>
    %c0_2 = arith.constant 0 : index
    %c0_3 = arith.constant 0 : index
    %4 = vector.load %arg3[%c0_2, %c0_3] : memref<8x128xf32, #tpu.memory_space<vmem>>, vector<8x128xf32>
    %5 = tpu.iota {dimensions = array<i32: 0>} : vector<8x128xi32>
    %6 = tpu.iota {dimensions = array<i32: 1>} : vector<8x128xi32>
    %c1_i32 = arith.constant 1 : i32
    %7 = arith.muli %arg0, %c1_i32 : i32
    %8 = arith.addi %7, %arg1 : i32
    %c8_i32 = arith.constant 8 : i32
    %9 = arith.muli %8, %c8_i32 : i32
    %10 = vector.broadcast %9 : i32 to vector<8x128xi32>
    %11 = arith.addi %10, %5 : vector<8x128xi32>
    %c128_i32 = arith.constant 128 : i32
    %12 = vector.broadcast %c128_i32 : i32 to vector<8x128xi32>
    %13 = arith.muli %11, %12 : vector<8x128xi32>
    %14 = arith.addi %13, %6 : vector<8x128xi32>
    %c64_i32 = arith.constant 64 : i32
    %15 = vector.broadcast %c64_i32 : i32 to vector<8x128xi32>
    %16 = arith.cmpi slt, %14, %15 : vector<8x128xi32>
    %17 = arith.extui %16 : vector<8x128xi1> to vector<8x128xi32>
    %18 = arith.sitofp %17 : vector<8x128xi32> to vector<8x128xf32>
    %cst = arith.constant 0.000000e+00 : f32
    %19 = vector.broadcast %cst : f32 to vector<8x128xf32>
    %20 = arith.cmpf ogt, %4, %19 : vector<8x128xf32>
    %cst_4 = arith.constant 1.000000e+00 : f32
    %cst_5 = arith.constant -1.000000e+00 : f32
    %21 = vector.broadcast %cst_4 : f32 to vector<8x128xf32>
    %22 = vector.broadcast %cst_5 : f32 to vector<8x128xf32>
    %23 = arith.select %20, %21, %22 : vector<8x128xi1>, vector<8x128xf32>
    %24 = arith.mulf %23, %3 : vector<8x128xf32>
    %cst_6 = arith.constant 1.000000e+00 : f32
    %25 = vector.broadcast %cst_6 : f32 to vector<8x128xf32>
    %26 = arith.subf %25, %24 : vector<8x128xf32>
    %cst_7 = arith.constant 0.000000e+00 : f32
    %27 = vector.broadcast %cst_7 : f32 to vector<8x128xf32>
    %28 = arith.maximumf %26, %27 : vector<8x128xf32>
    %29 = arith.mulf %28, %18 : vector<8x128xf32>
    %c0_8 = arith.constant 0 : index
    %c0_9 = arith.constant 0 : index
    %30 = vector.load %arg5[%c0_8, %c0_9] : memref<1x128xf32, #tpu.memory_space<vmem>>, vector<1x128xf32>
    %cst_10 = arith.constant dense<0.000000e+00> : vector<128xf32>
    %31 = vector.multi_reduction <add>, %29, %cst_10 [0] : vector<8x128xf32> to vector<128xf32>
    %32 = vector.shape_cast %31 : vector<128xf32> to vector<1x128xf32>
    %33 = arith.addf %30, %32 : vector<1x128xf32>
    %c0_11 = arith.constant 0 : index
    %c0_12 = arith.constant 0 : index
    %34 = vector.load %arg5[%c0_11, %c0_12] : memref<1x128xf32, #tpu.memory_space<vmem>>, vector<1x128xf32>
    tpu.vector_store %arg5[%c0_11, %c0_12], %33 {strides = array<i32>} : memref<1x128xf32, #tpu.memory_space<vmem>>, vector<1x128xf32>,
    %cst_13 = arith.constant 1.000000e+00 : f32
    %35 = vector.broadcast %cst_13 : f32 to vector<8x128xf32>
    %36 = arith.cmpf oeq, %4, %35 : vector<8x128xf32>
    %cst_14 = arith.constant 0.000000e+00 : f32
    %37 = vector.broadcast %cst_14 : f32 to vector<8x128xf32>
    %38 = arith.select %36, %18, %37 : vector<8x128xi1>, vector<8x128xf32>
    %c0_15 = arith.constant 0 : index
    %c0_16 = arith.constant 0 : index
    %39 = vector.load %arg6[%c0_15, %c0_16] : memref<1x128xf32, #tpu.memory_space<vmem>>, vector<1x128xf32>
    %40 = arith.mulf %3, %38 : vector<8x128xf32>
    %cst_17 = arith.constant dense<0.000000e+00> : vector<128xf32>
    %41 = vector.multi_reduction <add>, %40, %cst_17 [0] : vector<8x128xf32> to vector<128xf32>
    %42 = vector.shape_cast %41 : vector<128xf32> to vector<1x128xf32>
    %43 = arith.addf %39, %42 : vector<1x128xf32>
    %c0_18 = arith.constant 0 : index
    %c0_19 = arith.constant 0 : index
    %44 = vector.load %arg6[%c0_18, %c0_19] : memref<1x128xf32, #tpu.memory_space<vmem>>, vector<1x128xf32>
    tpu.vector_store %arg6[%c0_18, %c0_19], %43 {strides = array<i32>} : memref<1x128xf32, #tpu.memory_space<vmem>>, vector<1x128xf32>,
    %c0_20 = arith.constant 0 : index
    %c0_21 = arith.constant 0 : index
    %45 = vector.load %arg7[%c0_20, %c0_21] : memref<1x128xf32, #tpu.memory_space<vmem>>, vector<1x128xf32>
    %cst_22 = arith.constant dense<0.000000e+00> : vector<128xf32>
    %46 = vector.multi_reduction <add>, %38, %cst_22 [0] : vector<8x128xf32> to vector<128xf32>
    %47 = vector.shape_cast %46 : vector<128xf32> to vector<1x128xf32>
    %48 = arith.addf %45, %47 : vector<1x128xf32>
    %c0_23 = arith.constant 0 : index
    %c0_24 = arith.constant 0 : index
    %49 = vector.load %arg7[%c0_23, %c0_24] : memref<1x128xf32, #tpu.memory_space<vmem>>, vector<1x128xf32>
    tpu.vector_store %arg7[%c0_23, %c0_24], %48 {strides = array<i32>} : memref<1x128xf32, #tpu.memory_space<vmem>>, vector<1x128xf32>,
    %c0_25 = arith.constant 0 : index
    %c0_26 = arith.constant 0 : index
    %50 = vector.load %arg8[%c0_25, %c0_26] : memref<1x128xf32, #tpu.memory_space<vmem>>, vector<1x128xf32>
    %51 = arith.mulf %3, %18 : vector<8x128xf32>
    %cst_27 = arith.constant dense<0.000000e+00> : vector<128xf32>
    %52 = vector.multi_reduction <add>, %51, %cst_27 [0] : vector<8x128xf32> to vector<128xf32>
    %53 = vector.shape_cast %52 : vector<128xf32> to vector<1x128xf32>
    %54 = arith.addf %50, %53 : vector<1x128xf32>
    %c0_28 = arith.constant 0 : index
    %c0_29 = arith.constant 0 : index
    %55 = vector.load %arg8[%c0_28, %c0_29] : memref<1x128xf32, #tpu.memory_space<vmem>>, vector<1x128xf32>
    tpu.vector_store %arg8[%c0_28, %c0_29], %54 {strides = array<i32>} : memref<1x128xf32, #tpu.memory_space<vmem>>, vector<1x128xf32>,
    %c0_i32_30 = arith.constant 0 : i32
    %56 = arith.cmpi eq, %arg1, %c0_i32_30 : i32
    %57 = arith.extui %56 : i1 to i32
    %c0_i32_31 = arith.constant 0 : i32
    %58 = arith.cmpi ne, %57, %c0_i32_31 : i32
    scf.if %58 {
      %cst_32 = arith.constant 0.000000e+00 : f32
      %59 = vector.broadcast %cst_32 : f32 to vector<8x128xf32>
      %c0_33 = arith.constant 0 : index
      %c0_34 = arith.constant 0 : index
      %60 = vector.load %arg4[%c0_33, %c0_34] : memref<8x128xf32, #tpu.memory_space<vmem>>, vector<8x128xf32>
      tpu.vector_store %arg4[%c0_33, %c0_34], %59 {strides = array<i32>} : memref<8x128xf32, #tpu.memory_space<vmem>>, vector<8x128xf32>,
      %c0_35 = arith.constant 0 : index
      %c0_36 = arith.constant 0 : index
      %61 = vector.load %arg5[%c0_35, %c0_36] : memref<1x128xf32, #tpu.memory_space<vmem>>, vector<1x128xf32>
      %c0_37 = arith.constant 0 : index
      %c0_38 = arith.constant 0 : index
      %62 = vector.load %arg4[%c0_37, %c0_38] : memref<8x128xf32, #tpu.memory_space<vmem>>, vector<1x128xf32>
      tpu.vector_store %arg4[%c0_37, %c0_38], %61 {strides = array<i32>} : memref<8x128xf32, #tpu.memory_space<vmem>>, vector<1x128xf32>,
      %c0_39 = arith.constant 0 : index
      %c0_40 = arith.constant 0 : index
      %63 = vector.load %arg6[%c0_39, %c0_40] : memref<1x128xf32, #tpu.memory_space<vmem>>, vector<1x128xf32>
      %c1 = arith.constant 1 : index
      %c0_41 = arith.constant 0 : index
      %64 = vector.load %arg4[%c1, %c0_41] : memref<8x128xf32, #tpu.memory_space<vmem>>, vector<1x128xf32>
      tpu.vector_store %arg4[%c1, %c0_41], %63 {strides = array<i32>} : memref<8x128xf32, #tpu.memory_space<vmem>>, vector<1x128xf32>,
      %c0_42 = arith.constant 0 : index
      %c0_43 = arith.constant 0 : index
      %65 = vector.load %arg7[%c0_42, %c0_43] : memref<1x128xf32, #tpu.memory_space<vmem>>, vector<1x128xf32>
      %c2 = arith.constant 2 : index
      %c0_44 = arith.constant 0 : index
      %66 = vector.load %arg4[%c2, %c0_44] : memref<8x128xf32, #tpu.memory_space<vmem>>, vector<1x128xf32>
      tpu.vector_store %arg4[%c2, %c0_44], %65 {strides = array<i32>} : memref<8x128xf32, #tpu.memory_space<vmem>>, vector<1x128xf32>,
      %c0_45 = arith.constant 0 : index
      %c0_46 = arith.constant 0 : index
      %67 = vector.load %arg8[%c0_45, %c0_46] : memref<1x128xf32, #tpu.memory_space<vmem>>, vector<1x128xf32>
      %c3 = arith.constant 3 : index
      %c0_47 = arith.constant 0 : index
      %68 = vector.load %arg4[%c3, %c0_47] : memref<8x128xf32, #tpu.memory_space<vmem>>, vector<1x128xf32>
      tpu.vector_store %arg4[%c3, %c0_47], %67 {strides = array<i32>} : memref<8x128xf32, #tpu.memory_space<vmem>>, vector<1x128xf32>,
      %c0_48 = arith.constant 0 : index
      %c0_49 = arith.constant 0 : index
      %69 = vector.load %arg9[%c0_48, %c0_49] : memref<1x128xf32, #tpu.memory_space<vmem>>, vector<1x128xf32>
      %c4 = arith.constant 4 : index
      %c0_50 = arith.constant 0 : index
      %70 = vector.load %arg4[%c4, %c0_50] : memref<8x128xf32, #tpu.memory_space<vmem>>, vector<1x128xf32>
      tpu.vector_store %arg4[%c4, %c0_50], %69 {strides = array<i32>} : memref<8x128xf32, #tpu.memory_space<vmem>>, vector<1x128xf32>,
    } else {
    }
    return
  }
  func.func @transform_0(%arg0: i32, %arg1: i32) -> (i32, i32) {
    %c1_i32 = arith.constant 1 : i32
    %0 = arith.muli %arg0, %c1_i32 : i32
    %1 = arith.addi %0, %arg1 : i32
    %c0_i32 = arith.constant 0 : i32
    %c0_i32_0 = arith.constant 0 : i32
    return %1, %c0_i32 : i32, i32
  }
  func.func @transform_1(%arg0: i32, %arg1: i32) -> (i32, i32) {
    %c1_i32 = arith.constant 1 : i32
    %0 = arith.muli %arg0, %c1_i32 : i32
    %1 = arith.addi %0, %arg1 : i32
    %c0_i32 = arith.constant 0 : i32
    %c0_i32_0 = arith.constant 0 : i32
    return %1, %c0_i32 : i32, i32
  }
  func.func @transform_2(%arg0: i32, %arg1: i32) -> (i32, i32) {
    %c0_i32 = arith.constant 0 : i32
    %c0_i32_0 = arith.constant 0 : i32
    return %arg0, %c0_i32 : i32, i32
  }
}

</mosaic_0001>

<bundles_post_ra>
// kernel: tpu_custom_call.1
= control target key start
LH: loop header
LB: loop body
LE: loop exit
PB: predicated region body
PF: predicated region fallthrough
CT: control target
= control target key end

     0   :  { %7 = vsyncpa [#allocation8], 0  ;;  %s816_s0 = inlined_call_operand.hbm [shape: f32[16,128], index: 0, kind: input, shape index: {}]   ;;  %s817_s1 = inlined_call_operand.hbm [shape: f32[16,128], index: 1, kind: input, shape index: {}]   ;;  %s818_s2 = inlined_call_operand.hbm [shape: f32[16,128], index: 2, kind: output, shape index: {}]  }
   0x1   :  { %9 = vsyncpa [#allocation8 + $0x1], 0 }
   0x2   :  { %10 = vsyncpa [#allocation11], 0 }
   0x3   :  { %12 = vsyncpa [#allocation11 + $0x1], 0 }
   0x4   :  { %13 = vsyncpa [#allocation9], 0 }
   0x5   :  { %15 = vsyncpa [#allocation9 + $0x1], 0  ;;  %s675_s9 = smov 0   ;;  %s677_s10 = smov 0  }
   0x6   :  { %s679_s11 = smov 0   ;;  %s681_s12 = smov 0  }
   0x7   :  { %s683_s13 = smov 0   ;;  %s685_s14 = smov 0  }
   0x8 LB: > { %s423_s15 = sadd.s32 4294967295, %s656_s14   ;;  %s424_s16 = sadd.s32 4294967294, %s656_s14   ;;  %s656_s14 = sphi %s685_s14, %s21_s14   ;;  %s652_s13 = sphi %s683_s13, %s827_s13   ;;  %s648_s12 = sphi %s681_s12, %s826_s12   ;;  %s644_s11 = sphi %s679_s11, %s825_s11   ;;  %s640_s10 = sphi %s677_s10, %s824_s10   ;;  %s636_s9 = sphi %s675_s9, %s823_s9  }
   0x9   : > { %s33_s17 = sadd.s32 1, %s652_s13  ;;  %s42_s18 = sadd.s32 1, %s644_s11 }
   0xa   : > { %p35_p0 = scmp.ge.s32.totalorder %s33_s17, 2  ;;  %p49_p1 = scmp.ne.s32.totalorder %s644_s11, %s640_s10 }
   0xb   : > { %p50_p2 = scmp.eq.s32.totalorder %s656_s14, 0  ;;  %p55_p3 = scmp.ne.s32.totalorder %s640_s10, %s636_s9 }
   0xc   : > { %s829_s17 = smov (%p35_p0, %s33_s17), 0  ;;  %p56_p5 = scmp.eq.s32.totalorder %s423_s15, 0 }
   0xd   : > { %p716_p4 = por %p50_p2, %p49_p1  ;;  %s39_s20 = ssub.s32 %s652_s13, %s829_s17 }
   0xe   : > { %p107_p6 = scmp.eq.s32.totalorder %s423_s15, 1  ;;  %p40_p7 = scmp.eq.s32.totalorder %s39_s20, 0 }
   0xf   : > { %p722_p8 = por %p56_p5, %p55_p3  ;;  %p113_p10 = scmp.eq.s32.totalorder %s424_s16, 1 }
  0x10   : > { %p726_p9 = por %p107_p6, %p49_p1  ;;  %p426_p12 = scmp.ge.s32.totalorder %s656_s14, 2 }
  0x11   : > { %s731_s23 = scalar_select %p40_p7, %s644_s11, %s42_s18  }
  0x12   : > { %p733_p11 = por %p113_p10, %p55_p3  ;;  %p458_p13 = scmp.lt.s32.totalorder %s656_s14, 2 }
  0x13   : > { %s133_s25 = sand.u32 1, %s644_s11   ;;  %s428_s27 = sshll.u32 %s652_s13, 3 }
  0x14   : > { %s427_s26 = sshll.u32 %s133_s25, 3  ;;  %s142_s30 = scalar_lea.hbm %s816_s0, %s428_s27 }
  0x15   : > { %s137_s3 = scalar_lea.vmem [#allocation7], %s427_s26  ;;  %s144_s5 = sshll.u32 %s142_s30, 4  ;;  %s145_s5 = int_to_ptr.hbm [resolvable:$true] %s144_s5 }
  0x16   : > { %s146_s4 = sshll.u32 %s137_s3, 4  ;;  %p448_p0 = pnand %p458_p13, %p716_p4  ;;  %s147_s4 = int_to_ptr.vmem [resolvable:$true] %s146_s4 }
  0x17   : > { %p431_p1 = scmp.ge.s32.totalorder %s656_s14, 1  ;;  %p171_p2 = scmp.lt.s32.totalorder %s656_s14, 3 }
  0x18   : > { %s134_s6 = scalar_lea.sflag [#allocation8], %s133_s25  ;;  %s162_s15 = scalar_lea.hbm %s817_s1, %s428_s27 }
  0x19   : > { %450 = dma.hbm_to_vmem [thread:$0]  (!%p448_p0), %s145_s5, 128, %s147_s4, %s134_s6  }
  0x1a   : > { %p172_p3 = pnand %p431_p1, %p171_p2  ;;  %s157_s16 = scalar_lea.vmem [#allocation10], %s427_s26 }
  0x1b   : > { %s166_s18 = sshll.u32 %s157_s16, 4  ;;  %s164_s20 = sshll.u32 %s162_s15, 4  ;;  %s167_s18 = int_to_ptr.vmem [resolvable:$true] %s166_s18  ;;  %s165_s20 = int_to_ptr.hbm [resolvable:$true] %s164_s20 }
  0x1c   : > { %s154_s28 = scalar_lea.sflag [#allocation11], %s133_s25  ;;  %175 = sbr.rel (%p172_p3) target bundleno = 77 (0x4d), region = 28 }
  0x1d   : > { %453 = dma.hbm_to_vmem [thread:$0]  (!%p448_p0), %s165_s20, 128, %s167_s18, %s154_s28  }
  0x1e   : > { %s752_s19 = sand.u32 (!%p172_p3), 1, %s640_s10  }
  0x1f   : > { %s432_s29 = sshll.u32 (!%p172_p3), %s752_s19, 3  ;;  %s178_s30 = scalar_lea.sflag (!%p172_p3), [#allocation8], %s752_s19 }
  0x20   : > { %s181_s3 = scalar_lea.vmem (!%p172_p3), [#allocation7], %s432_s29 }
  0x21   : > { %623 = dma.done.wait (%p722_p8), %s178_s30, 128  }
  0x22   : > { %625 = vsyncadd (%p722_p8), %s178_s30, 4294967168  ;;  %s188_s26 = scalar_lea.sflag [#allocation11], %s752_s19  ;;  %s191_s25 = scalar_lea.vmem [#allocation10], %s432_s29 }
  0x23   : > { %627 = dma.done.wait (%p722_p8), %s188_s26, 128  }
  0x24   : > { %629 = vsyncadd (%p722_p8), %s188_s26, 4294967168  ;;  %v231_v0 = vlaneseq  ;;  %s435_s27 = sshll.u32 %s648_s12, 3  ;;  %v658_v1 = vmov 0.0   ;;  %s768_s4 = scalar_lea.vmem [#allocation12], %s432_s29  ;;  %v229_v7 = vld [vmem:[%s181_s3] sm:$0xff]  ;;  %v230_v8 = vld [vmem:[%s191_s25] sm:$0xff] }
  0x25   : > { %224 = vst [vmem:[#allocation2] sm:$0x1] %v658_v1  ;;  %v237_v2 = vstv %s435_s27  ;;  %vm244_vm0 = vcmp.gt.f32.partialorder %v230_v8, 0.0  ;;  %v659_v10 = vmov -1.0   ;;  %vm259_vm1 = vcmp.eq.f32.partialorder %v230_v8, 1.0  ;;  %s315_s6 = scalar_lea.hbm %s818_s2, %s435_s27  ;;  %s317_s7 = sshll.u32 %s768_s4, 4  ;;  %s318_s7 = int_to_ptr.vmem [resolvable:$true] %s317_s7 }
  0x26   : > { %225 = vst [vmem:[#allocation3] sm:$0x1] %v658_v1  ;;  %v232_v3 = vshrl.u32 %v231_v0, 7  ;;  %v234_v4 = vand.u32 127, %v231_v0  ;;  %v245_v11 = vsel %vm244_vm0, 1.0, %v659_v10  ;;  %s319_s8 = sshll.u32 %s315_s6, 4  ;;  %s320_s8 = int_to_ptr.hbm [resolvable:$true] %s319_s8 }
  0x27   : > { %226 = vst [vmem:[#allocation4] sm:$0x1] %v658_v1  ;;  %v246_v12 = vmul.f32 %v245_v11, %v229_v7  ;;  %s305_s15 = scalar_lea.sflag [#allocation9], %s752_s19  ;;  %s584_s16 = sshra.s32 %s320_s8, 4  ;;  %s585_s16 = int_to_ptr.hbm [resolvable:$true] %s584_s16 }
  0x28   : > { %227 = vst [vmem:[#allocation5] sm:$0x1] %v658_v1  ;;  %v238_v5 = vadd.s32 %v237_v2, %v232_v3  ;;  %s586_s12 = scalar_lea.hbm %s585_s16, 8  ;;  %s590_s28 = scalar_lea.hbm %s818_s2, 16 }
  0x29   : > { %228 = vst [vmem:[#allocation6] sm:$0x1] %v658_v1  ;;  %v247_v14 = vsub.f32 1.0, %v246_v12  ;;  %p587_p4 = scmp.ne.s32.totalorder %s585_s16, %s586_s12  ;;  %p591_p7 = scmp.lt.s32.totalorder %s585_s16, %s818_s2 }
  0x2a   : > { %v239_v6 = vmul.u32 128, %v238_v5  ;;  %293 = vst [vmem:[%s768_s4] sm:$0xff] %v658_v1  ;;  %p592_p8 = scmp.lt.s32.totalorder %s590_s28, %s586_s12 }
  0x2b   : > { %v248_v20 = vmax.f32 %v247_v14, 0.0  ;;  %p588_p5 = pnand %p587_p4, %p726_p9 }
  0x2c   : > { %v240_v9 = vadd.s32 %v239_v6, %v234_v4  ;;  %v250_v49 = vld [vmem:[#allocation2] sm:$0x1]  ;;  %p593_p10 = por %p592_p8, %p591_p7 }
  0x2d   : > { %v261_v43 = vld [vmem:[#allocation3] sm:$0x1]  ;;  %p589_p6 = pneg %p588_p5 }
  0x2e   : > { %vm241_vm2 = vcmp.lt.s32.totalorder %v240_v9, 64  ;;  %v271_v37 = vld [vmem:[#allocation4] sm:$0x1] }
  0x2f   : > { %v436_v13 = vsel %vm241_vm2, 1.0, %v658_v1  ;;  %v280_v41 = vld [vmem:[#allocation5] sm:$0x1]  ;;  %p594_p13 = pnand %p593_p10, %p589_p6 }
  0x30   : > { %v260_v15 = vsel %vm259_vm1, %v436_v13, 0.0  ;;  %v281_v16 = vmul.f32 %v436_v13, %v229_v7  ;;  %v302_v17 = vld [vmem:[#allocation6] sm:$0x1]  ;;  %v249_v24 = vmul.f32 %v436_v13, %v248_v20 }
  0x31   : > { %v262_v18 = vmul.f32 %v260_v15, %v229_v7  ;;  %v272_v19 = vrot.slane %v260_v15, 4  ;;  %303 = vst [vmem:[%s768_s4 + $0x4] sm:$0x1] %v302_v17 }
  0x32   : > { %v282_v21 = vrot.slane %v281_v16, 4  ;;  %v251_v28 = vrot.slane %v249_v24, 4 }
  0x33   : > { %v263_v22 = vrot.slane %v262_v18, 4  ;;  %v273_v23 = vadd.f32 %v272_v19, %v260_v15 }
  0x34   : > { %v283_v25 = vadd.f32 %v282_v21, %v281_v16  ;;  %v252_v32 = vadd.f32 %v251_v28, %v249_v24 }
  0x35   : > { %v264_v26 = vadd.f32 %v263_v22, %v262_v18  ;;  %v274_v27 = vrot.slane %v273_v23, 2 }
  0x36   : > { %v284_v29 = vrot.slane %v283_v25, 2  ;;  %v253_v36 = vrot.slane %v252_v32, 2 }
  0x37   : > { %v265_v30 = vrot.slane %v264_v26, 2  ;;  %v275_v31 = vadd.f32 %v274_v27, %v273_v23 }
  0x38   : > { %v285_v33 = vadd.f32 %v284_v29, %v283_v25  ;;  %v254_v42 = vadd.f32 %v253_v36, %v252_v32 }
  0x39   : > { %v266_v34 = vadd.f32 %v265_v30, %v264_v26  ;;  %v276_v35 = vrot.slane %v275_v31, 1 }
  0x3a   : > { %v286_v38 = vrot.slane %v285_v33, 1  ;;  %v255_v47 = vrot.slane %v254_v42, 1 }
  0x3b   : > { %v267_v39 = vrot.slane %v266_v34, 1  ;;  %v277_v40 = vadd.f32 %v276_v35, %v275_v31 }
  0x3c   : > { %v287_v44 = vadd.f32 %v286_v38, %v285_v33  ;;  %v256_v51 = vadd.f32 %v255_v47, %v254_v42 }
  0x3d   : > { %v268_v45 = vadd.f32 %v267_v39, %v266_v34  ;;  %v278_v46 = vadd.f32 %v277_v40, %v271_v37 }
  0x3e   : > { %v288_v48 = vadd.f32 %v287_v44, %v280_v41  ;;  %v257_v52 = vadd.f32 %v256_v51, %v250_v49 }
  0x3f   : > { %v269_v50 = vadd.f32 %v268_v45, %v261_v43  ;;  %279 = vst [vmem:[#allocation4] sm:$0x1] %v278_v46 }
  0x40   : > { %289 = vst [vmem:[#allocation5] sm:$0x1] %v288_v48 }
  0x41   : > { %270 = vst [vmem:[#allocation3] sm:$0x1] %v269_v50 }
  0x42   : > { %258 = vst [vmem:[#allocation2] sm:$0x1] %v257_v52 }
  0x46   : > { %v298_v53 = vld [vmem:[#allocation4] sm:$0x1] }
  0x47   : > { %299 = vst [vmem:[%s768_s4 + $0x2] sm:$0x1] %v298_v53  ;;  %v300_v54 = vld [vmem:[#allocation5] sm:$0x1] }
  0x48   : > { %v296_v55 = vld [vmem:[#allocation3] sm:$0x1]  ;;  %301 = vst [vmem:[%s768_s4 + $0x3] sm:$0x1] %v300_v54 }
  0x49   : > { %297 = vst [vmem:[%s768_s4 + $0x1] sm:$0x1] %v296_v55  ;;  %v294_v56 = vld [vmem:[#allocation2] sm:$0x1] }
  0x4a   : > { %295 = vst [vmem:[%s768_s4] sm:$0x1] %v294_v56 }
  0x4b   : > { %597 = shalt.err (!%p594_p13)
}
  0x4c   : > { %445 = dma.vmem_to_hbm [thread:$0]  (%p726_p9), %s318_s7, 128, %s320_s8, %s305_s15  }
  0x4d PF: > { %s331_s19 = sand.u32 1, %s636_s9   ;;  %p455_p0 = pnand %p426_p12, %p733_p11 }
  0x4e   : > { %s332_s3 = scalar_lea.sflag [#allocation9], %s331_s19 }
  0x4f   : > { %p456_p1 = pneg %p455_p0 }
  0x51   : > { %631 = dma.done.wait (%p456_p1), %s332_s3, 128  }
  0x52   : > { %633 = vsyncadd (%p456_p1), %s332_s3, 4294967168  ;;  %s21_s14 = sadd.s32 1, %s656_s14   ;;  %s823_s9 = smov %s640_s10 }
  0x53   : > { %p18_p2 = scmp.ge.s32.totalorder %s21_s14, 4   ;;  %s824_s10 = smov %s644_s11 }
  0x54   : > { %s825_s11 = smov %s731_s23  ;;  %s826_s12 = smov %s652_s13 }
  0x55   : > { %s827_s13 = smov %s829_s17  ;;  %20 = sbr.rel (!%p18_p2) target bundleno = 8 (0x8), region = 94 }
  0x5a   :  { %338 = vsyncpa [#allocation8], 1 }
  0x5b   :  { %340 = vsyncpa [#allocation8 + $0x1], 1 }
  0x5c   :  { %341 = vsyncpa [#allocation11], 1 }
  0x5d   :  { %343 = vsyncpa [#allocation11 + $0x1], 1 }
  0x5e   :  { %344 = vsyncpa [#allocation9], 1 }
  0x5f   :  { %346 = vsyncpa [#allocation9 + $0x1], 1 }

</bundles_post_ra>
